<compile_context>
chip_gen: v6e
topology: v6e:2x2x1
jax: 0.10.0
libtpu: 0.0.40
codegen_flags: <defaults>
</compile_context>

<pallas_src>
import functools

import jax
import jax.numpy as jnp
import numpy as np
from jax import lax
from jax.experimental import pallas as pl
from jax.experimental.pallas import tpu as pltpu


def _ceil_to(x: int, m: int) -> int:
    return ((x + m - 1) // m) * m


# ---------------------------------------------------------------------------
# Kernels
# ---------------------------------------------------------------------------
def _bounds_kernel_full_k(w_ref, cr_ref, b_ref, out_ref):
    """Full-K path: one (tm, K) slab of W per grid step, no reduction axis.

    w_ref   : (tm, K)  f32
    cr_ref  : (2, K)   f32   row 0 = center, row 1 = radius (resident block)
    b_ref   : (1, tm)  f32
    out_ref : (2, tm)  f32   row 0 = lower, row 1 = upper (lane-dense)
    """
    w = w_ref[...]
    c = cr_ref[0:1, :]
    r = cr_ref[1:2, :]
    ctr = lax.dot_general(c, w, (((1,), (1,)), ((), ())),
                          preferred_element_type=jnp.float32)      # (1, tm)
    rad = lax.dot_general(r, jnp.abs(w), (((1,), (1,)), ((), ())),
                          preferred_element_type=jnp.float32)      # (1, tm)
    center = ctr + b_ref[...]
    out_ref[...] = jnp.concatenate([center - rad, center + rad],
                                   axis=0).astype(out_ref.dtype)


def _bounds_kernel_split_k(w_ref, cr_ref, b_ref, out_ref,
                           acc_c_ref, acc_r_ref, *, in_dim, tk):
    """K-tiled path: grid = (M tiles, K tiles), K innermost reduction axis.

    w_ref   : (tm, tk) f32   (last K tile may be ragged -> masked below)
    cr_ref  : (2, tk)  f32   zero-padded in the wrapper to a tk multiple
    b_ref   : (1, tm)  f32
    out_ref : (2, tm)  f32
    acc_*   : (1, tm)  f32   lane-dense VMEM accumulators
    """
    k = pl.program_id(1)

    @pl.when(k == 0)
    def _init():
        acc_c_ref[...] = jnp.zeros_like(acc_c_ref)
        acc_r_ref[...] = jnp.zeros_like(acc_r_ref)

    w = w_ref[...]
    if in_dim % tk != 0:
        # Ragged last K tile: out-of-bounds region of the block is undefined,
        # so zero it before it can contribute to either reduction.
        col = k * tk + lax.broadcasted_iota(jnp.int32, w.shape, 1)
        w = jnp.where(col < in_dim, w, 0.0)

    c = cr_ref[0:1, :]
    r = cr_ref[1:2, :]
    acc_c_ref[...] += lax.dot_general(c, w, (((1,), (1,)), ((), ())),
                                      preferred_element_type=jnp.float32)
    acc_r_ref[...] += lax.dot_general(r, jnp.abs(w), (((1,), (1,)), ((), ())),
                                      preferred_element_type=jnp.float32)

    @pl.when(k == pl.num_programs(1) - 1)
    def _finalize():
        center = acc_c_ref[...] + b_ref[...]
        radius = acc_r_ref[...]
        out_ref[...] = jnp.concatenate([center - radius, center + radius],
                                       axis=0).astype(out_ref.dtype)


# ---------------------------------------------------------------------------
# Wrapper
# ---------------------------------------------------------------------------
_VMEM_LIMIT = 48 * 1024 * 1024  # safe on v5e/v6e (128 MiB) and v7x (64 MiB)


@functools.partial(jax.jit, static_argnames=("max_tile_bytes",))
def linear_transformer_forward(weights, bias, bounds, *,
                               max_tile_bytes: int = 8 * 1024 * 1024):
    """Pallas replacement for LinearTransformer.forward (steps_backsub == 0).

    Returns bounds of shape (out_dim, 2): column 0 = lower, column 1 = upper.
    """
    weights = jnp.asarray(weights, jnp.float32)
    bounds = jnp.asarray(bounds, jnp.float32)
    out_dim, in_dim = weights.shape
    assert bounds.shape == (in_dim, 2)
    if bias is None:
        bias = jnp.zeros((out_dim,), jnp.float32)
    bias = jnp.asarray(bias, jnp.float32).reshape(1, out_dim)

    # center / radius (mathematically identical to the clamp form).
    lo = bounds[:, 0]
    hi = bounds[:, 1]
    cr = jnp.stack([(lo + hi) * 0.5, (hi - lo) * 0.5], axis=0)   # (2, in_dim)

    # ---- tile selection (all static Python ints) --------------------------
    w_bytes = out_dim * in_dim * 4
    small_bytes = min(2 * 1024 * 1024, max_tile_bytes)
    min_m = min(128, out_dim)
    row_slab_bytes = 4 * in_dim * min_m   # minimal-M, full-K W tile

    if w_bytes <= small_bytes:
        # Small-layer fast path: one full-array block, zero padding anywhere.
        tm, tk = out_dim, in_dim
    elif row_slab_bytes <= max_tile_bytes:
        # Tile M only; keep the full K axis in each W slab.
        tk = in_dim
        if out_dim <= 128:
            tm = out_dim
        else:
            units_vmem = max(1, max_tile_bytes // (128 * in_dim * 4))
            units_par = max(1, out_dim // (4 * 128))   # aim for >= 4 M tiles
            tm = 128 * min(4, units_vmem, units_par)   # cap tm at 512
    else:
        # Tile both M and K (huge in_dim).
        tm = out_dim if out_dim <= 128 else 128
        units_k = max(1, max_tile_bytes // (tm * 128 * 4))
        tk = min(128 * units_k, _ceil_to(in_dim, 128))

    if tk == in_dim:
        # --------------------- full-K path (no reduction axis) -------------
        grid = (pl.cdiv(out_dim, tm),)
        out2 = pl.pallas_call(
            _bounds_kernel_full_k,
            out_shape=jax.ShapeDtypeStruct((2, out_dim), jnp.float32),
            grid_spec=pltpu.PrefetchScalarGridSpec(
                num_scalar_prefetch=0,
                grid=grid,
                in_specs=[
                    pl.BlockSpec((tm, in_dim), lambda i: (i, 0)),  # W slab
                    pl.BlockSpec((2, in_dim), lambda i: (0, 0)),   # c/r resident
                    pl.BlockSpec((1, tm), lambda i: (0, i)),       # bias tile
                ],
                out_specs=pl.BlockSpec((2, tm), lambda i: (0, i)),
            ),
            compiler_params=pltpu.CompilerParams(
                dimension_semantics=("parallel",),
                vmem_limit_bytes=_VMEM_LIMIT,
            ),
        )(weights, cr, bias)
    else:
        # --------------------- K-tiled reduction path ----------------------
        k_pad = _ceil_to(in_dim, tk)
        # Only the tiny (2, in_dim) c/r array is padded; W is never copied.
        cr_p = jnp.pad(cr, ((0, 0), (0, k_pad - in_dim)))
        grid = (pl.cdiv(out_dim, tm), k_pad // tk)
        kern = functools.partial(_bounds_kernel_split_k, in_dim=in_dim, tk=tk)
        out2 = pl.pallas_call(
            kern,
            out_shape=jax.ShapeDtypeStruct((2, out_dim), jnp.float32),
            grid_spec=pltpu.PrefetchScalarGridSpec(
                num_scalar_prefetch=0,
                grid=grid,
                in_specs=[
                    pl.BlockSpec((tm, tk), lambda i, k: (i, k)),   # W tile
                    pl.BlockSpec((2, tk), lambda i, k: (0, k)),    # c/r chunk
                    pl.BlockSpec((1, tm), lambda i, k: (0, i)),    # bias tile
                ],
                out_specs=pl.BlockSpec((2, tm), lambda i, k: (0, i)),
                scratch_shapes=[
                    pltpu.VMEM((1, tm), jnp.float32),   # acc for W @ c
                    pltpu.VMEM((1, tm), jnp.float32),   # acc for |W| @ r
                ],
            ),
            compiler_params=pltpu.CompilerParams(
                dimension_semantics=("parallel", "arbitrary"),
                vmem_limit_bytes=_VMEM_LIMIT,
            ),
        )(weights, cr_p, bias)

    return out2.T  # (out_dim, 2): col 0 = lower, col 1 = upper


# ---------------------------------------------------------------------------
# Reference + tests
# ---------------------------------------------------------------------------
def _reference(weights, bias, bounds):
    """Plain-JAX reference with the exact PyTorch (clamp-based) semantics."""
    wp = jnp.maximum(weights, 0.0)
    wn = jnp.minimum(weights, 0.0)
    ref_lo = wp @ bounds[:, 0] + wn @ bounds[:, 1]
    ref_hi = wp @ bounds[:, 1] + wn @ bounds[:, 0]
    ref = jnp.stack([ref_lo, ref_hi], axis=1)
    if bias is not None:
        ref = ref + bias.reshape(-1, 1)
    return ref


if __name__ == "__main__":
    key = jax.random.PRNGKey(0)

    def make_case(key, out_dim, in_dim):
        k_w, k_b, k_lo, k_rad = jax.random.split(key, 4)
        weights = jax.random.normal(k_w, (out_dim, in_dim), jnp.float32) * 0.1
        bias = jax.random.normal(k_b, (out_dim,), jnp.float32) * 0.1
        lo = jax.random.normal(k_lo, (in_dim,), jnp.float32)
        rad = jax.random.uniform(k_rad, (in_dim,), jnp.float32)
        bounds = jnp.stack([lo, lo + rad], axis=1)  # (in_dim, 2), lower<=upper
        return weights, bias, bounds

    k1, k2, k3, k4 = jax.random.split(key, 4)

    def check(out, w, b, bd):
        np.testing.assert_allclose(np.asarray(out),
                                   np.asarray(_reference(w, b, bd)),
                                   rtol=5e-5, atol=5e-5)

    # Case 1: hidden=32 (the module's typical small layer) -> single block.
    w1, b1, bd1 = make_case(k1, out_dim=32, in_dim=32)
    out1 = jax.block_until_ready(linear_transformer_forward(w1, b1, bd1))
    assert out1.shape == (32, 2)
    check(out1, w1, b1, bd1)

    # Case 2: non-aligned dims -> single full-array block, zero padding.
    w2, b2, bd2 = make_case(k2, out_dim=40, in_dim=70)
    out2 = jax.block_until_ready(linear_transformer_forward(w2, b2, bd2))
    assert out2.shape == (40, 2)
    check(out2, w2, b2, bd2)

    # Case 3: force the M-tiled (full-K) path with a ragged last M block.
    w3, b3, bd3 = make_case(k3, out_dim=300, in_dim=256)
    out3 = jax.block_until_ready(
        linear_transformer_forward(w3, b3, bd3, max_tile_bytes=128 * 1024))
    assert out3.shape == (300, 2)
    check(out3, w3, b3, bd3)

    # Case 4: force the K-tiled path with a ragged (masked) last K tile.
    w4, b4, bd4 = make_case(k4, out_dim=96, in_dim=400)
    out4 = jax.block_until_ready(
        linear_transformer_forward(w4, b4, bd4, max_tile_bytes=64 * 1024))
    assert out4.shape == (96, 2)
    check(out4, w4, b4, bd4)

    print("KERNEL_OK")
</pallas_src>

<mosaic_0001>
module attributes {stable_mosaic.version = 11 : i64} {
  func.func @_bounds_kernel_full_k(%arg0: i32, %arg1: memref<32x32xf32, #tpu.memory_space<vmem>>, %arg2: memref<2x32xf32, #tpu.memory_space<vmem>>, %arg3: memref<1x32xf32, #tpu.memory_space<vmem>>, %arg4: memref<2x32xf32, #tpu.memory_space<vmem>>) attributes {dimension_semantics = [#tpu.dimension_semantics<parallel>], iteration_bounds = array<i64: 1>, scalar_prefetch = 0 : i64, scratch_operands = 0 : i64, tpu.core_type = #tpu.core_type<tc>, window_params = [{transform_indices = @transform_0, window_bounds = array<i64: 32, 32>}, {pipeline_mode = #tpu.pipeline_mode<synchronous>, transform_indices = @transform_1, window_bounds = array<i64: 2, 32>}, {transform_indices = @transform_2, window_bounds = array<i64: 1, 32>}, {transform_indices = @transform_3, window_bounds = array<i64: 2, 32>}]} {
    %c0 = arith.constant 0 : index
    %c0_0 = arith.constant 0 : index
    %0 = vector.load %arg1[%c0, %c0_0] : memref<32x32xf32, #tpu.memory_space<vmem>>, vector<32x32xf32>
    %c0_1 = arith.constant 0 : index
    %c0_2 = arith.constant 0 : index
    %1 = vector.load %arg2[%c0_1, %c0_2] : memref<2x32xf32, #tpu.memory_space<vmem>>, vector<1x32xf32>
    %c1 = arith.constant 1 : index
    %c0_3 = arith.constant 0 : index
    %2 = vector.load %arg2[%c1, %c0_3] : memref<2x32xf32, #tpu.memory_space<vmem>>, vector<1x32xf32>
    %cst = arith.constant dense<0.000000e+00> : vector<1x32xf32>
    %3 = tpu.matmul %1, %0, %cst {dimension_numbers = #tpu.dot_dimension_numbers<[1], [1], [0], [0], [0, 0, 1, 0], [], []>} : vector<1x32xf32>, vector<32x32xf32>, vector<1x32xf32> -> vector<1x32xf32>
    %4 = math.absf %0 : vector<32x32xf32>
    %cst_4 = arith.constant dense<0.000000e+00> : vector<1x32xf32>
    %5 = tpu.matmul %2, %4, %cst_4 {dimension_numbers = #tpu.dot_dimension_numbers<[1], [1], [0], [0], [0, 0, 1, 0], [], []>} : vector<1x32xf32>, vector<32x32xf32>, vector<1x32xf32> -> vector<1x32xf32>
    %c0_5 = arith.constant 0 : index
    %c0_6 = arith.constant 0 : index
    %6 = vector.load %arg3[%c0_5, %c0_6] : memref<1x32xf32, #tpu.memory_space<vmem>>, vector<1x32xf32>
    %7 = arith.addf %3, %6 : vector<1x32xf32>
    %8 = arith.subf %7, %5 : vector<1x32xf32>
    %9 = arith.addf %7, %5 : vector<1x32xf32>
    %10 = tpu.concatenate %8, %9 in 0 : vector<1x32xf32>, vector<1x32xf32> -> vector<2x32xf32>
    %c0_7 = arith.constant 0 : index
    %c0_8 = arith.constant 0 : index
    %11 = vector.load %arg4[%c0_7, %c0_8] : memref<2x32xf32, #tpu.memory_space<vmem>>, vector<2x32xf32>
    tpu.vector_store %arg4[%c0_7, %c0_8], %10 {strides = array<i32>} : memref<2x32xf32, #tpu.memory_space<vmem>>, vector<2x32xf32>,
    return
  }
  func.func @transform_0(%arg0: i32) -> (i32, i32) {
    %c0_i32 = arith.constant 0 : i32
    %c0_i32_0 = arith.constant 0 : i32
    return %arg0, %c0_i32 : i32, i32
  }
  func.func @transform_1(%arg0: i32) -> (i32, i32) {
    %c0_i32 = arith.constant 0 : i32
    %c0_i32_0 = arith.constant 0 : i32
    %c0_i32_1 = arith.constant 0 : i32
    return %c0_i32, %c0_i32_0 : i32, i32
  }
  func.func @transform_2(%arg0: i32) -> (i32, i32) {
    %c0_i32 = arith.constant 0 : i32
    %c0_i32_0 = arith.constant 0 : i32
    return %c0_i32, %arg0 : i32, i32
  }
  func.func @transform_3(%arg0: i32) -> (i32, i32) {
    %c0_i32 = arith.constant 0 : i32
    %c0_i32_0 = arith.constant 0 : i32
    return %c0_i32, %arg0 : i32, i32
  }
}

</mosaic_0001>

<bundles_post_ra>
// kernel: linear_transformer_forward.1
= control target key start
LH: loop header
LB: loop body
LE: loop exit
PB: predicated region body
PF: predicated region fallthrough
CT: control target
= control target key end

     0   :  { %8 = vsyncpa [#allocation3], 0  ;;  %s378_s0 = inlined_call_operand.hbm [shape: f32[32,32], index: 0, kind: input, shape index: {}]   ;;  %s379_s1 = inlined_call_operand.vmem [shape: f32[2,32], index: 1, kind: input, shape index: {}]   ;;  %s380_s2 = inlined_call_operand.vmem [shape: f32[1,32], index: 2, kind: input, shape index: {}]   ;;  %s381_s3 = inlined_call_operand.hbm [shape: f32[2,32], index: 3, kind: output, shape index: {}]  }
   0x1   :  { %9 = vsyncpa [#allocation4], 0  ;;  %s327_s12 = smov [#allocation2]  }
   0x2   :  { %s15_s13 = sshll.u32 %s327_s12, 4  ;;  %s16_s13 = int_to_ptr.vmem [resolvable:$true] %s15_s13 }
   0x3   :  { %s291_s14 = scalar_lea.vmem %s16_s13, 512  ;;  %p296_p1 = scmp.lt.s32.totalorder %s16_s13, %s16_s13 }
   0x4   :  { %p292_p0 = scmp.ne.s32.totalorder %s16_s13, %s291_s14  ;;  %p297_p2 = scmp.lt.s32.totalorder %s291_s14, %s291_s14 }
   0x6   :  { %p298_p3 = por %p297_p2, %p296_p1 }
   0x8   :  { %p299_p4 = pnand %p298_p3, %p292_p0 }
   0xa   :  { %302 = shalt.err (!%p299_p4)
}
   0xb   :  { %s328_s15 = smov 128   ;;  %s329_s16 = smov 8  }
   0xc   :  { %21 = dma.hbm_to_vmem [thread:$0]  %s378_s0, 512, %s16_s13, [#allocation3], %s328_s15, %s328_s15, %s329_s16  }
   0xd   :  { %323 = dma.done.wait [#allocation3], 512  }
   0xe   :  { %324 = vsyncadd [#allocation3], 4294966784  ;;  %v330_v0 = vmov 0.0   ;;  %vm331_vm0 = vmmov 0   ;;  %vm39_vm1 = vcmask 261120   ;;  %v32_v1 = vld [vmem:[#allocation2 + $0x18] sm:$0xff] }
   0xf   :  { %266 = vmatprep.subr.mxu1 %v330_v0  ;;  %255 = vmatprep.subr.mxu0 %v330_v0  ;;  %v31_v2 = vld [vmem:[#allocation2 + $0x10] sm:$0xff]  ;;  %v38_v3 = vand.u32 2147483647, %v32_v1  ;;  %v30_v5 = vld [vmem:[#allocation2 + $0x8] sm:$0xff]  ;;  %v29_v7 = vld [vmem:[#allocation2] sm:$0xff]  ;;  %s332_s24 = smov [#allocation5]  }
  0x10   :  { %274 = vmatprep.mubr.msk.f32.mxu1 %vm331_vm0, %v330_v0  ;;  %263 = vmatprep.mubr.msk.f32.mxu0 %vm331_vm0, %v330_v0  ;;  %v37_v4 = vand.u32 2147483647, %v31_v2  ;;  %v36_v6 = vand.u32 2147483647, %v30_v5  ;;  %v35_v8 = vand.u32 2147483647, %v29_v7 }
  0x11   :  { %267 = vmatpush3.xpose.msk.msra.mxu1 %vm39_vm1, %v32_v1  ;;  %256 = vmatpush3.xpose.msk.msra.mxu0 %vm39_vm1, %v38_v3  ;;  %v33_v9 = vld [vmem:[%s379_s1] sm:$0x1]  ;;  %v34_v10 = vld [vmem:[%s379_s1 + $0x1] sm:$0x1]  ;;  %s226_s25 = sshll.u32 %s332_s24, 4  ;;  %vm216_vm2 = vcmask 1040384   ;;  %s227_s25 = int_to_ptr.vmem [resolvable:$true] %s226_s25 }
  0x12   :  { %268 = vmatprep.subr.mxu1 %v330_v0  ;;  %257 = vmatprep.subr.mxu0 %v330_v0  ;;  %v125_v11 = vld [vmem:[%s380_s2] sm:$0x1]  ;;  %vm218_vm3 = vcmask 254976   ;;  %s303_s1 = scalar_lea.vmem %s227_s25, 32  ;;  %p308_p6 = scmp.lt.s32.totalorder %s227_s25, %s227_s25 }
  0x13   :  { %p304_p5 = scmp.ne.s32.totalorder %s227_s25, %s303_s1  ;;  %p309_p7 = scmp.lt.s32.totalorder %s303_s1, %s303_s1 }
  0x15   :  { %269 = vmatpush3.xpose.msk.msra.mxu1 %vm39_vm1, %v31_v2  ;;  %258 = vmatpush3.xpose.msk.msra.mxu0 %vm39_vm1, %v37_v4  ;;  %p310_p8 = por %p309_p7, %p308_p6 }
  0x16   :  { %270 = vmatprep.subr.mxu1 %v330_v0  ;;  %259 = vmatprep.subr.mxu0 %v330_v0 }
  0x17   :  { %p311_p9 = pnand %p310_p8, %p304_p5 }
  0x19   :  { %271 = vmatpush3.xpose.msk.msra.mxu1 %vm39_vm1, %v30_v5  ;;  %260 = vmatpush3.xpose.msk.msra.mxu0 %vm39_vm1, %v36_v6 }
  0x1a   :  { %272 = vmatprep.subr.mxu1 %v330_v0  ;;  %261 = vmatprep.subr.mxu0 %v330_v0 }
  0x1d   :  { %273 = vmatpush3.xpose.msk.msra.mxu1 %vm39_vm1, %v29_v7  ;;  %262 = vmatpush3.xpose.msk.msra.mxu0 %vm39_vm1, %v35_v8 }
  0x20   :  { %275 = vmatmul.mubr.msk.f32.vlgmr.msra.gmra.mxu1 %vm39_vm1, %v33_v9  ;;  %264 = vmatmul.mubr.msk.f32.vlgmr.msra.gmra.mxu0 %vm39_vm1, %v34_v10 }
  0xe0   :  { %v207_v12 = vpop.f32.mrf.mxu1  ;;  %v121_v14 = vpop.f32.mrf.mxu0 }
  0xe1   :  { %v208_v13 = vadd.f32 %v207_v12, %v125_v11 }
  0xe2   :  { %v276_v15 = vpop.f32.mrf.mxu1  ;;  %v265_v17 = vpop.f32.mrf.mxu0 }
  0xe3   :  { %v212_v16 = vadd.f32 %v208_v13, %v121_v14  ;;  %v211_v18 = vsub.f32 %v208_v13, %v121_v14 }
  0xe5   :  { %v214_v19 = vrot.slane %v212_v16, 7 }
  0xe7   :  { %v217_v20 = vsel %vm216_vm2, %v211_v18, %v214_v19 }
  0xe8   :  { %219 = vst.msk [vmem:[#allocation5] sm:$0x3] %vm218_vm3, %v217_v20 }
  0xe9   :  { %314 = shalt.err (!%p311_p9)
}
  0xea   :  { %229 = dma.vmem_to_hbm [thread:$0]  %s227_s25, 32, %s381_s3, [#allocation4]  }
  0xeb   :  { %325 = dma.done.wait [#allocation4], 32  }
  0xec   :  { %326 = vsyncadd [#allocation4], 4294967264 }
  0xed   :  { %233 = vsyncpa [#allocation3], 1 }
  0xee   :  { %234 = vsyncpa [#allocation4], 1 }

</bundles_post_ra>
